<compile_context>
chip_gen: v7x
topology: tpu7x:2x2x1
jax: 0.10.0
libtpu: 0.0.40
codegen_flags: <defaults>
</compile_context>

<pallas_src>
import math

import jax
import jax.numpy as jnp
from jax.experimental import pallas as pl
from jax.experimental.pallas import tpu as pltpu


def _pe_add_kernel(x_ref, pe_ref, o_ref):
    """One grid step: o = x + pe on a lane-dense (tR, L) tile.  Pure VPU add,
    HBM-bandwidth bound; add is done in the promoted dtype then cast back."""
    o_ref[...] = (x_ref[...] + pe_ref[...]).astype(o_ref.dtype)


def _pick_pack_factor(D):
    """Smallest r such that r*D is a multiple of 128 (lane-dense last dim)."""
    return 128 // math.gcd(D, 128)


def _pick_row_tile(R, L, dtype_bytes, target_bytes):
    """Largest sublane-aligned row tile whose (tR, L) block fits target_bytes.

    Never returns an over-budget tile: if no aligned divisor of R fits, returns
    the budget-sized tile and the caller pads R up to a multiple of it.
    """
    sub = max(8, 32 // dtype_bytes)          # 8 (f32), 16 (bf16), 32 (int8/fp8)
    bytes_per_row = L * dtype_bytes
    max_rows = max(sub, (target_bytes // max(bytes_per_row, 1)) // sub * sub)
    if R <= max_rows:
        return R                             # whole-R block (full-dim blocks are legal)
    for t in range(max_rows, sub - 1, -sub): # prefer aligned divisors (no row padding)
        if R % t == 0:
            return t
    return max_rows                          # caller pads R to a multiple of this


def _vmem_budget_bytes():
    """Scoped-VMEM budget: derived from the chip when possible, capped at 48 MiB
    (fits v7x's 64 MiB physical VMEM; well under v5e/v6e's 128 MiB)."""
    try:
        cap = pltpu.get_tpu_info().vmem_capacity_bytes
    except Exception:
        cap = 64 << 20                       # conservative fallback (v7x per-TC)
    return min(48 << 20, (cap * 3) // 4)


@jax.jit
def positional_encoding(x, div_term):
    """x: [B, S, D]; div_term: [D//2] (the module's registered buffer)."""
    B, S, D = x.shape
    assert D % 2 == 0, "d_model must be even (matches the PyTorch module)"
    dtype_bytes = jnp.dtype(x.dtype).itemsize

    # Lane-dense packing: r consecutive positions share one (r*D)-wide row.
    r = _pick_pack_factor(D)
    L = r * D                                # always a multiple of 128
    R = -(-S // r)                           # rows before tile padding

    budget = _vmem_budget_bytes()
    target_bytes = budget // 8               # ~6 live tiles (2x x, 2x pe, 2x out) + headroom
    tR = _pick_row_tile(R, L, dtype_bytes, target_bytes)

    # v7x megacore: with a single batch element, keep >=2 programs on the
    # (parallel) sequence axis so both TensorCores get work.
    sub = max(8, 32 // dtype_bytes)
    if B == 1 and tR >= R and R > sub:
        tR = max(sub, ((R + 1) // 2) // sub * sub)

    R_pad = -(-R // tR) * tR
    S_pad = R_pad * r

    xp = x
    if S_pad != S:
        xp = jnp.pad(x, ((0, 0), (0, S_pad - S), (0, 0)))
    xp = xp.reshape(B, R_pad, L)

    # Exact sinusoidal table (even columns sin, odd columns cos), packed lane-dense.
    pos = jnp.arange(S_pad, dtype=jnp.float32)[:, None]           # (S_pad, 1)
    args = pos * div_term[None, :].astype(jnp.float32)            # (S_pad, D//2)
    pe = jnp.stack([jnp.sin(args), jnp.cos(args)], axis=-1)       # (S_pad, D//2, 2)
    pe = pe.reshape(S_pad, D).reshape(R_pad, L)                   # (R_pad, L) f32

    grid = (R_pad // tR, B)                  # both axes independent -> both parallel

    out = pl.pallas_call(
        _pe_add_kernel,
        out_shape=jax.ShapeDtypeStruct((B, R_pad, L), x.dtype),
        grid_spec=pltpu.PrefetchScalarGridSpec(
            num_scalar_prefetch=0,
            grid=grid,
            in_specs=[
                pl.BlockSpec((None, tR, L), lambda t, b: (b, t, 0)),  # x tile
                pl.BlockSpec((tR, L), lambda t, b: (t, 0)),           # PE tile (reused over b)
            ],
            out_specs=pl.BlockSpec((None, tR, L), lambda t, b: (b, t, 0)),
        ),
        compiler_params=pltpu.CompilerParams(
            dimension_semantics=("parallel", "parallel"),
            vmem_limit_bytes=budget,
        ),
    )(xp, pe)

    out = out.reshape(B, S_pad, D)
    if S_pad != S:
        out = out[:, :S, :]
    return out


def reference(x, div_term):
    """Pure-JAX reference matching the PyTorch forward exactly."""
    B, S, D = x.shape
    position = jnp.arange(S, dtype=jnp.float32)[:, None]          # (S, 1)
    args = position * div_term[None, :].astype(jnp.float32)       # (S, D//2)
    pe = jnp.zeros((S, D), dtype=jnp.float32)
    pe = pe.at[:, 0::2].set(jnp.sin(args))
    pe = pe.at[:, 1::2].set(jnp.cos(args))
    return x + pe[None, :, :]


if __name__ == "__main__":
    key = jax.random.PRNGKey(0)
    B, S, D = 2, 8, 32

    # Deterministic "buffer" init, exactly as the PyTorch __init__ computes it.
    div_term = jnp.exp(
        jnp.arange(0, D, 2, dtype=jnp.float32) * (-math.log(10000.0) / D)
    )
    x = jax.random.normal(key, (B, S, D), dtype=jnp.float32)

    out = jax.block_until_ready(positional_encoding(x, div_term))
    ref = reference(x, div_term)

    assert out.shape == (B, S, D)
    assert jnp.allclose(out, ref, atol=1e-5, rtol=1e-5), "mismatch vs reference"

    print("KERNEL_OK")
</pallas_src>

<mosaic_0001>
module attributes {stable_mosaic.version = 11 : i64} {
  func.func @_pe_add_kernel(%arg0: i32, %arg1: i32, %arg2: memref<1x2x128xf32, #tpu.memory_space<vmem>>, %arg3: memref<2x128xf32, #tpu.memory_space<vmem>>, %arg4: memref<1x2x128xf32, #tpu.memory_space<vmem>>) attributes {dimension_semantics = [#tpu.dimension_semantics<parallel>, #tpu.dimension_semantics<parallel>], iteration_bounds = array<i64: 1, 2>, scalar_prefetch = 0 : i64, scratch_operands = 0 : i64, tpu.core_type = #tpu.core_type<tc>, window_params = [{transform_indices = @transform_0, window_bounds = array<i64: 1, 2, 128>}, {transform_indices = @transform_1, window_bounds = array<i64: 2, 128>}, {transform_indices = @transform_2, window_bounds = array<i64: 1, 2, 128>}]} {
    %c0 = arith.constant 0 : index
    %c0_0 = arith.constant 0 : index
    %c0_1 = arith.constant 0 : index
    %0 = vector.load %arg2[%c0, %c0_0, %c0_1] : memref<1x2x128xf32, #tpu.memory_space<vmem>>, vector<1x2x128xf32>
    %1 = vector.shape_cast %0 : vector<1x2x128xf32> to vector<2x128xf32>
    %c0_2 = arith.constant 0 : index
    %c0_3 = arith.constant 0 : index
    %2 = vector.load %arg3[%c0_2, %c0_3] : memref<2x128xf32, #tpu.memory_space<vmem>>, vector<2x128xf32>
    %3 = arith.addf %1, %2 : vector<2x128xf32>
    %c0_4 = arith.constant 0 : index
    %c0_5 = arith.constant 0 : index
    %c0_6 = arith.constant 0 : index
    %4 = vector.load %arg4[%c0_4, %c0_5, %c0_6] : memref<1x2x128xf32, #tpu.memory_space<vmem>>, vector<1x2x128xf32>
    %5 = vector.shape_cast %4 : vector<1x2x128xf32> to vector<2x128xf32>
    %6 = vector.shape_cast %3 : vector<2x128xf32> to vector<1x2x128xf32>
    tpu.vector_store %arg4[%c0_4, %c0_5, %c0_6], %6 {strides = array<i32>} : memref<1x2x128xf32, #tpu.memory_space<vmem>>, vector<1x2x128xf32>,
    return
  }
  func.func @transform_0(%arg0: i32, %arg1: i32) -> (i32, i32, i32) {
    %c0_i32 = arith.constant 0 : i32
    %c0_i32_0 = arith.constant 0 : i32
    return %arg1, %arg0, %c0_i32 : i32, i32, i32
  }
  func.func @transform_1(%arg0: i32, %arg1: i32) -> (i32, i32) {
    %c0_i32 = arith.constant 0 : i32
    %c0_i32_0 = arith.constant 0 : i32
    return %arg0, %c0_i32 : i32, i32
  }
  func.func @transform_2(%arg0: i32, %arg1: i32) -> (i32, i32, i32) {
    %c0_i32 = arith.constant 0 : i32
    %c0_i32_0 = arith.constant 0 : i32
    return %arg1, %arg0, %c0_i32 : i32, i32, i32
  }
}

</mosaic_0001>

<bundles_post_ra>
// kernel: positional_encoding.1
= control target key start
LH: loop header
LB: loop body
LE: loop exit
PB: predicated region body
PF: predicated region fallthrough
CT: control target
= control target key end

     0   :  { %s354_s9 = smov 0   ;;  %s331_s10 = smov 0   ;;  %s368_s0 = inlined_call_operand.vmem [shape: f32[2,2,128], index: 0, kind: input, shape index: {}]   ;;  %s369_s1 = inlined_call_operand.vmem [shape: f32[2,128], index: 1, kind: input, shape index: {}]   ;;  %s370_s2 = inlined_call_operand.vmem [shape: f32[2,2,128], index: 2, kind: output, shape index: {}]  }
   0x1   :  { %s335_s11 = smov 0  }
   0x2 LB: > { %s21_s12 = sadd.s32 1, %s333_s10  ;;  %p286_p0 = scmp.ge.s32.totalorder %s337_s11, 1  ;;  %s337_s11 = sphi %s335_s11, %s12_s11   ;;  %s333_s10 = sphi %s331_s10, %s332_s10   ;;  %s329_s9 = sphi %s354_s9, %s371_s9  }
   0x3   : > { %p22_p1 = scmp.ge.s32.totalorder %s21_s12, 2  ;;  %p139_p2 = scmp.lt.s32.totalorder %s337_s11, 3 }
   0x5   : > { %s373_s12 = smov (%p22_p1, %s21_s12), 0  ;;  %p140_p3 = pnand %p286_p0, %p139_p2 }
   0x6   : > { %p169_p4 = scmp.lt.s32.totalorder (!%p140_p3), %s329_s9, 1  ;;  %v188_v0 = vld [vmem:[%s369_s1] sm:$0x3] (!%p140_p3) }
   0x7   : > { %143 = sbr.rel (%p140_p3) target bundleno = 21 (0x15), region = 28 }
   0xe   : > { %s375_s9 = smov (!%p169_p4, %s329_s9), 1 }
   0xf   : > { %s287_s13 = sshll.u32 %s375_s9, 1 }
  0x10   : > { %s175_s18 = scalar_lea.vmem %s368_s0, %s287_s13  ;;  %s186_s21 = scalar_lea.vmem %s370_s2, %s287_s13 }
  0x11   : > { %v187_v1 = vld [vmem:[%s175_s18] sm:$0x3] }
  0x12   : > { %v189_v2 = vadd.f32 %v188_v0, %v187_v1 }
  0x14   : > { %190 = vst [vmem:[%s186_s21] sm:$0x3] %v189_v2 }
  0x15 PF: > { %s12_s11 = sadd.s32 1, %s337_s11   ;;  %s371_s9 = smov %s333_s10 }
  0x16   : > { %p9_p5 = scmp.ge.s32.totalorder %s12_s11, 4   ;;  %s332_s10 = smov %s373_s12  }
  0x18   :  { %11 = sbr.rel (!%p9_p5) target bundleno = 2 (0x2), region = 61 }

</bundles_post_ra>
